<compile_context>
chip_gen: v6e
topology: v6e:2x2x1
jax: 0.10.0
libtpu: 0.0.40
codegen_flags: <defaults>
</compile_context>

<pallas_src>
import math
import jax
import jax.numpy as jnp
from jax.experimental import pallas as pl
from jax.experimental.pallas import tpu as pltpu


def _round_up(x, m):
    return ((x + m - 1) // m) * m


def _linear_kernel(x_ref, w_ref, b_ref, o_ref):
    # x_ref: (TILE_M, n_hid)      -- row tile of the input
    # w_ref: (n_hid, n_class)     -- pre-transposed weight, resident across steps
    # b_ref: (1, n_class)         -- bias, resident across steps
    # o_ref: (TILE_M, n_class)    -- output tile (true class width, no padding)
    acc = jnp.dot(x_ref[...], w_ref[...], preferred_element_type=jnp.float32)
    o_ref[...] = (acc + b_ref[...].astype(jnp.float32)).astype(o_ref.dtype)


def prepare_classifier_params(weight, bias):
    """One-time parameter prep (hoisted out of the per-call forward).

    weight: [n_class, n_hid] (PyTorch nn.Linear layout)
    bias:   [n_class]
    returns (w_t [n_hid, n_class], bias_2d [1, n_class])
    """
    w_t = jnp.asarray(weight).T          # MXU-friendly RHS layout [K, N]
    b_2d = jnp.asarray(bias).reshape(1, -1)
    return w_t, b_2d


def _pick_tile_m(n, n_hid, n_class, itemsize, *, max_tile_m, vmem_budget_bytes):
    """Row tile sized against a VMEM budget; multiple of 8 sublanes."""
    # Per grid step (double-buffered): x tile + output tile. Weight/bias are
    # resident (constant index_map) and tiny, ignore them in the budget.
    bytes_per_row = 2 * (n_hid + n_class) * itemsize
    tm = vmem_budget_bytes // max(bytes_per_row, 1)
    tm = min(tm, max_tile_m, _round_up(n, 8))
    tm = max(8, (tm // 8) * 8)           # (8,128) sublane rule
    # Prefer >=2 row tiles for large n so both TensorCores (v7x) get work.
    if n >= 4096 and -(-n // tm) < 2:    # cdiv(n, tm) < 2
        tm = max(8, _round_up(-(-n // 2), 8))
    return tm


def hgnn_classifier(x, w_t, b_2d, *, max_tile_m=8192, vmem_budget_bytes=8 << 20):
    """Forward of HGNN_classifier: fc1(x) = x @ W^T + b.

    x:    [N, n_hid]
    w_t:  [n_hid, n_class]   (pre-transposed, from prepare_classifier_params)
    b_2d: [1, n_class]
    returns [N, n_class]
    """
    n, n_hid = x.shape
    n_class = w_t.shape[1]
    itemsize = jnp.dtype(x.dtype).itemsize

    tm = _pick_tile_m(n, n_hid, n_class, itemsize,
                      max_tile_m=max_tile_m, vmem_budget_bytes=vmem_budget_bytes)
    grid = (pl.cdiv(n, tm),)

    bytes_accessed = (n * n_hid + n_hid * n_class + n_class + n * n_class) * itemsize
    cost = pl.CostEstimate(
        flops=2 * n * n_hid * n_class,
        transcendentals=0,
        bytes_accessed=bytes_accessed,
    )

    out = pl.pallas_call(
        _linear_kernel,
        out_shape=jax.ShapeDtypeStruct((n, n_class), x.dtype),
        grid=grid,
        in_specs=[
            pl.BlockSpec((tm, n_hid), lambda i: (i, 0)),        # row tile of x
            pl.BlockSpec((n_hid, n_class), lambda i: (0, 0)),   # weight, resident
            pl.BlockSpec((1, n_class), lambda i: (0, 0)),       # bias, resident
        ],
        out_specs=pl.BlockSpec((tm, n_class), lambda i: (i, 0)),
        compiler_params=pltpu.CompilerParams(
            dimension_semantics=("parallel",),                  # independent row tiles
        ),
        cost_estimate=cost,
    )(x, w_t, b_2d)

    return out


def init_linear_params(key, n_hid, n_class, dtype=jnp.float32):
    """Deterministic init matching nn.Linear default: U(-1/sqrt(in), 1/sqrt(in))."""
    k_w, k_b = jax.random.split(key)
    bound = 1.0 / math.sqrt(n_hid)
    weight = jax.random.uniform(
        k_w, (n_class, n_hid), dtype=dtype, minval=-bound, maxval=bound
    )
    bias = jax.random.uniform(
        k_b, (n_class,), dtype=dtype, minval=-bound, maxval=bound
    )
    return weight, bias


if __name__ == "__main__":
    key = jax.random.PRNGKey(0)
    k_x, k_p = jax.random.split(key)

    # Small shapes consistent with the module: n_hid=32 hidden features,
    # n_class=8 output classes, batch of N=16 node embeddings.
    N, n_hid, n_class = 16, 32, 8

    x = jax.random.normal(k_x, (N, n_hid), dtype=jnp.float32)
    weight, bias = init_linear_params(k_p, n_hid, n_class)

    # One-time param prep (hoisted out of the forward).
    w_t, b_2d = prepare_classifier_params(weight, bias)

    out = hgnn_classifier(x, w_t, b_2d)
    out = jax.block_until_ready(out)

    # Reference check in plain JAX (same semantics as torch nn.Linear forward).
    ref = x @ weight.T + bias
    assert out.shape == (N, n_class)
    assert jnp.allclose(out, ref, atol=1e-5, rtol=1e-5)

    print("KERNEL_OK")
</pallas_src>

<mosaic_0001>
module attributes {stable_mosaic.version = 11 : i64} {
  func.func @_linear_kernel(%arg0: i32, %arg1: memref<16x32xf32, #tpu.memory_space<vmem>>, %arg2: memref<32x8xf32, #tpu.memory_space<vmem>>, %arg3: memref<1x8xf32, #tpu.memory_space<vmem>>, %arg4: memref<16x8xf32, #tpu.memory_space<vmem>>) attributes {dimension_semantics = [#tpu.dimension_semantics<parallel>], iteration_bounds = array<i64: 1>, scalar_prefetch = 0 : i64, scratch_operands = 0 : i64, tpu.core_type = #tpu.core_type<tc>, window_params = [{transform_indices = @transform_0, window_bounds = array<i64: 16, 32>}, {pipeline_mode = #tpu.pipeline_mode<synchronous>, transform_indices = @transform_1, window_bounds = array<i64: 32, 8>}, {pipeline_mode = #tpu.pipeline_mode<synchronous>, transform_indices = @transform_2, window_bounds = array<i64: 1, 8>}, {transform_indices = @transform_3, window_bounds = array<i64: 16, 8>}]} {
    %c0 = arith.constant 0 : index
    %c0_0 = arith.constant 0 : index
    %0 = vector.load %arg1[%c0, %c0_0] : memref<16x32xf32, #tpu.memory_space<vmem>>, vector<16x32xf32>
    %c0_1 = arith.constant 0 : index
    %c0_2 = arith.constant 0 : index
    %1 = vector.load %arg2[%c0_1, %c0_2] : memref<32x8xf32, #tpu.memory_space<vmem>>, vector<32x8xf32>
    %cst = arith.constant dense<0.000000e+00> : vector<16x8xf32>
    %2 = tpu.matmul %0, %1, %cst {dimension_numbers = #tpu.dot_dimension_numbers<[1], [0], [0], [1], [0, 0, 1, 1], [], []>} : vector<16x32xf32>, vector<32x8xf32>, vector<16x8xf32> -> vector<16x8xf32>
    %c0_3 = arith.constant 0 : index
    %c0_4 = arith.constant 0 : index
    %3 = vector.load %arg3[%c0_3, %c0_4] : memref<1x8xf32, #tpu.memory_space<vmem>>, vector<1x8xf32>
    %4 = vector.broadcast %3 : vector<1x8xf32> to vector<16x8xf32>
    %5 = arith.addf %2, %4 : vector<16x8xf32>
    %c0_5 = arith.constant 0 : index
    %c0_6 = arith.constant 0 : index
    %6 = vector.load %arg4[%c0_5, %c0_6] : memref<16x8xf32, #tpu.memory_space<vmem>>, vector<16x8xf32>
    tpu.vector_store %arg4[%c0_5, %c0_6], %5 {strides = array<i32>} : memref<16x8xf32, #tpu.memory_space<vmem>>, vector<16x8xf32>,
    return
  }
  func.func @transform_0(%arg0: i32) -> (i32, i32) {
    %c0_i32 = arith.constant 0 : i32
    %c0_i32_0 = arith.constant 0 : i32
    return %arg0, %c0_i32 : i32, i32
  }
  func.func @transform_1(%arg0: i32) -> (i32, i32) {
    %c0_i32 = arith.constant 0 : i32
    %c0_i32_0 = arith.constant 0 : i32
    %c0_i32_1 = arith.constant 0 : i32
    return %c0_i32, %c0_i32_0 : i32, i32
  }
  func.func @transform_2(%arg0: i32) -> (i32, i32) {
    %c0_i32 = arith.constant 0 : i32
    %c0_i32_0 = arith.constant 0 : i32
    %c0_i32_1 = arith.constant 0 : i32
    return %c0_i32, %c0_i32_0 : i32, i32
  }
  func.func @transform_3(%arg0: i32) -> (i32, i32) {
    %c0_i32 = arith.constant 0 : i32
    %c0_i32_0 = arith.constant 0 : i32
    return %arg0, %c0_i32 : i32, i32
  }
}

</mosaic_0001>

<bundles_post_ra>
// kernel: tpu_custom_call.1
= control target key start
LH: loop header
LB: loop body
LE: loop exit
PB: predicated region body
PF: predicated region fallthrough
CT: control target
= control target key end

     0   :  { %vm27_vm0 = vcmask 261120   ;;  %vm109_vm1 = vcmask 64512   ;;  %s185_s1 = inlined_call_operand.vmem [shape: f32[32,8], index: 1, kind: input, shape index: {}]   ;;  %s186_s0 = inlined_call_operand.vmem [shape: f32[16,32], index: 0, kind: input, shape index: {}]   ;;  %s187_s2 = inlined_call_operand.vmem [shape: f32[1,8], index: 2, kind: input, shape index: {}]   ;;  %s188_s3 = inlined_call_operand.vmem [shape: f32[16,8], index: 3, kind: output, shape index: {}]  }
   0x1   :  { %v19_v0 = vld [vmem:[%s185_s1 + $0x18] sm:$0xff]  ;;  %v18_v1 = vld [vmem:[%s185_s1 + $0x10] sm:$0xff]  ;;  %v14_v2 = vld [vmem:[%s186_s0] sm:$0xff] }
   0x2   :  { %125 = vmatprep.subr.mxu0 %v19_v0  ;;  %v17_v3 = vld [vmem:[%s185_s1 + $0x8] sm:$0xff]  ;;  %133 = vmatprep.mubr.msk.f32.mxu0 %vm27_vm0, %v14_v2  ;;  %v16_v4 = vld [vmem:[%s185_s1] sm:$0xff] }
   0x3   :  { %126 = vmatpush3.msra.mxu0 %v19_v0  ;;  %v15_v5 = vld [vmem:[%s186_s0 + $0x8] sm:$0xff]  ;;  %v116_v6 = vld [vmem:[%s187_s2] ss:$0 sm:$0xff] }
   0x4   :  { %127 = vmatprep.subr.mxu0 %v18_v1 }
   0x5   :  { %128 = vmatpush3.msra.mxu0 %v18_v1 }
   0x6   :  { %129 = vmatprep.subr.mxu0 %v17_v3 }
   0x7   :  { %130 = vmatpush3.msra.mxu0 %v17_v3 }
   0x8   :  { %131 = vmatprep.subr.mxu0 %v16_v4 }
   0x9   :  { %132 = vmatpush3.msra.mxu0 %v16_v4 }
   0xa   :  { %134 = vmatmul.mubr.msk.f32.vlgmr.msra.gmra.mxu0 %vm27_vm0, %v15_v5 }
  0xca   :  { %v135_v7 = vpop.f32.mrf.mxu0 }
  0xcb   :  { %v106_v8 = vadd.f32 %v135_v7, %v116_v6 }
  0xcc   :  { %v100_v9 = vpop.f32.mrf.mxu0 }
  0xcd   :  { %111 = vst.msk [vmem:[%s188_s3 + $0x8] sm:$0xff] %vm109_vm1, %v106_v8  ;;  %v101_v10 = vadd.f32 %v116_v6, %v100_v9 }
  0xcf   :  { %110 = vst.msk [vmem:[%s188_s3] sm:$0xff] %vm109_vm1, %v101_v10 }

</bundles_post_ra>
